<compile_context>
chip_gen: v5e
topology: v5e:2x2
jax: 0.10.0
libtpu: 0.0.40
codegen_flags: <defaults>
</compile_context>

<pallas_src>
import jax
import jax.numpy as jnp
from jax.experimental import pallas as pl
from jax.experimental.pallas import tpu as pltpu


def cnn_block(x_nchw, weight, gamma, beta, running_mean, running_var,
              *, stride=1, padding=1, eps=1e-5, images_per_block=None):
    """Fused Conv2d(bias=False) + BatchNorm2d(eval) + LeakyReLU(0.1).

    x_nchw : (N, C_in, H, W)      weight : (C_out, C_in, KH, KW)
    gamma/beta/running_mean/running_var : (C_out,)
    Returns (N, C_out, H_out, W_out) in the input dtype.
    """
    N, C_in, H, W = x_nchw.shape
    C_out, C_in_w, KH, KW = weight.shape
    assert C_in_w == C_in, (C_in_w, C_in)
    if stride != 1:
        raise NotImplementedError("fused Pallas path supports stride == 1 only")

    KK = KH * KW
    H_pad, W_pad = H + 2 * padding, W + 2 * padding
    H_out = H_pad - KH + 1
    W_out = W_pad - KW + 1
    assert H_out >= 1 and W_out >= 1

    # Lane width of every shifted slab and of the per-image output tile (kept in a
    # "padded width" layout so every tap is one contiguous window of the flat axis).
    LW = H_out * W_pad

    # --- input prep: ONE pad pass on bf16 data (cast before padding) -------------
    # One extra bottom row covers the (KW-1)-element tail the last tap needs.
    extra_rows = 1 if KW > 1 else 0
    xp = jnp.pad(x_nchw.astype(jnp.bfloat16),
                 ((0, 0), (0, 0), (padding, padding + extra_rows),
                  (padding, padding)))
    flat_len = (H_pad + extra_rows) * W_pad
    xflat = xp.reshape(N, C_in, flat_len)
    assert (KH - 1) * W_pad + (KW - 1) + LW <= flat_len

    # --- fold BN (eval) into the conv weights (f32), keep only the shift ---------
    inv_std = 1.0 / jnp.sqrt(running_var.astype(jnp.float32) + eps)
    scale = gamma.astype(jnp.float32) * inv_std                       # (C_out,)
    shift = (beta.astype(jnp.float32)
             - running_mean.astype(jnp.float32) * scale).reshape(C_out, 1)
    w_folded = weight.astype(jnp.float32) * scale[:, None, None, None]
    # Stack the taps along the contraction dim: column (k*C_in + c) <- w[:, c, kh, kw]
    w_stacked = jnp.transpose(w_folded, (0, 2, 3, 1)).reshape(C_out, KK * C_in)
    w_stacked = w_stacked.astype(jnp.bfloat16)

    out_dtype = x_nchw.dtype
    out_itemsize = jnp.dtype(out_dtype).itemsize

    # --- images per grid step ------------------------------------------------------
    if images_per_block is None:
        bytes_per_image = (2 * C_in * flat_len * 2          # double-buffered input
                           + 2 * C_out * LW * out_itemsize  # double-buffered output
                           + KK * C_in * LW * 2)            # stacked-tap scratch
        cap = max(1, (16 << 20) // max(1, bytes_per_image))  # ~16 MiB budget
        want = max(1, N // 2) if N >= 2 else 1               # keep >=2 steps (v7x 2 TCs)
        images_per_block = min(want, cap, N)
        while N % images_per_block != 0:                     # need an exact divisor
            images_per_block -= 1
    Nb = images_per_block
    assert N % Nb == 0

    # --- fused kernel -----------------------------------------------------------
    def kernel(x_ref, w_ref, shift_ref, o_ref, xs_ref):
        # x_ref     : (Nb, C_in, flat_len) bf16   whole padded image(s), channel-major
        # w_ref     : (C_out, KK*C_in)     bf16   BN-scale-folded, tap-stacked weights
        # shift_ref : (C_out, 1)           f32
        # o_ref     : (Nb, C_out, LW)      out dtype
        # xs_ref    : (KK*C_in, Nb*LW)     bf16   VMEM scratch of shifted slabs
        for b in range(Nb):                              # static unroll
            for k in range(KK):                          # static unroll over taps
                kh, kw = divmod(k, KW)
                s = kh * W_pad + kw                      # static window offset
                xs_ref[k * C_in:(k + 1) * C_in, b * LW:(b + 1) * LW] = \
                    x_ref[b, :, s:s + LW]
        # ONE MXU matmul: (C_out, KK*C_in) @ (KK*C_in, Nb*LW), f32 accumulation.
        acc = jnp.dot(w_ref[...], xs_ref[...],
                      preferred_element_type=jnp.float32)
        # f32 epilogue: BN shift (scale already in weights) + LeakyReLU(0.1).
        y = acc + shift_ref[...]
        y = jnp.where(y > 0.0, y, 0.1 * y)
        for b in range(Nb):
            o_ref[b] = y[:, b * LW:(b + 1) * LW].astype(o_ref.dtype)

    out = pl.pallas_call(
        kernel,
        out_shape=jax.ShapeDtypeStruct((N, C_out, LW), out_dtype),
        grid_spec=pltpu.PrefetchScalarGridSpec(
            num_scalar_prefetch=0,
            grid=(N // Nb,),
            in_specs=[
                # padded images for this step (re-DMA'd only when the step changes)
                pl.BlockSpec((Nb, C_in, flat_len), lambda n: (n, 0, 0)),
                # invariant operands: constant index_map -> stay resident in VMEM
                pl.BlockSpec((C_out, KK * C_in), lambda n: (0, 0)),
                pl.BlockSpec((C_out, 1), lambda n: (0, 0)),
            ],
            # lane-dense channel-major output tile (already NCHW-ready)
            out_specs=pl.BlockSpec((Nb, C_out, LW), lambda n: (n, 0, 0)),
            scratch_shapes=[pltpu.VMEM((KK * C_in, Nb * LW), jnp.bfloat16)],
        ),
        compiler_params=pltpu.CompilerParams(
            dimension_semantics=("parallel",)),          # batch axis -> v7x megacore
    )(xflat, w_stacked, shift)

    # Drop the padded columns; output is already NCHW (no transpose needed).
    out = out.reshape(N, C_out, H_out, W_pad)[:, :, :, :W_out]
    return out


if __name__ == "__main__":
    # CNNBlock(in_channels=4, out_channels=8, kernel_size=3, stride=1, padding=1)
    N, C_in, H, W = 2, 4, 16, 16
    C_out, KH, KW = 8, 3, 3

    key = jax.random.PRNGKey(0)
    kx, kw_, kg, kb, km, kv = jax.random.split(key, 6)

    x = jax.random.normal(kx, (N, C_in, H, W), dtype=jnp.float32)
    weight = jax.random.normal(kw_, (C_out, C_in, KH, KW), dtype=jnp.float32) * 0.1
    gamma = 1.0 + 0.1 * jax.random.normal(kg, (C_out,), dtype=jnp.float32)
    beta = 0.1 * jax.random.normal(kb, (C_out,), dtype=jnp.float32)
    run_mean = 0.1 * jax.random.normal(km, (C_out,), dtype=jnp.float32)
    run_var = jax.random.uniform(kv, (C_out,), dtype=jnp.float32,
                                 minval=0.5, maxval=1.5)

    y = cnn_block(x, weight, gamma, beta, run_mean, run_var,
                  stride=1, padding=1)
    jax.block_until_ready(y)
    assert y.shape == (N, C_out, H, W), y.shape

    # Reference check (f32 XLA conv + eval BN + LeakyReLU); generous tolerance
    # because the kernel uses bf16 MXU inputs (with BN scale folded) + f32 accum.
    conv = jax.lax.conv_general_dilated(
        x, weight, window_strides=(1, 1), padding=((1, 1), (1, 1)),
        dimension_numbers=("NCHW", "OIHW", "NCHW"))
    bn = ((conv - run_mean[None, :, None, None])
          * (gamma / jnp.sqrt(run_var + 1e-5))[None, :, None, None]
          + beta[None, :, None, None])
    ref = jnp.where(bn > 0, bn, 0.1 * bn)
    assert jnp.allclose(y, ref, atol=5e-2, rtol=5e-2), float(jnp.max(jnp.abs(y - ref)))

    print("KERNEL_OK")
</pallas_src>

<mosaic_0001>
module attributes {stable_mosaic.version = 11 : i64} {
  func.func @kernel(%arg0: i32, %arg1: memref<1x4x342xbf16, #tpu.memory_space<vmem>>, %arg2: memref<8x36xbf16, #tpu.memory_space<vmem>>, %arg3: memref<8x1xf32, #tpu.memory_space<vmem>>, %arg4: memref<1x8x288xf32, #tpu.memory_space<vmem>>, %arg5: memref<36x288xbf16, #tpu.memory_space<vmem>>) attributes {dimension_semantics = [#tpu.dimension_semantics<parallel>], iteration_bounds = array<i64: 2>, scalar_prefetch = 0 : i64, scratch_operands = 1 : i64, tpu.core_type = #tpu.core_type<tc>, window_params = [{transform_indices = @transform_0, window_bounds = array<i64: 1, 4, 342>}, {pipeline_mode = #tpu.pipeline_mode<synchronous>, transform_indices = @transform_1, window_bounds = array<i64: 8, 36>}, {pipeline_mode = #tpu.pipeline_mode<synchronous>, transform_indices = @transform_2, window_bounds = array<i64: 8, 1>}, {transform_indices = @transform_3, window_bounds = array<i64: 1, 8, 288>}]} {
    %c0 = arith.constant 0 : index
    %c0_0 = arith.constant 0 : index
    %c0_1 = arith.constant 0 : index
    %0 = vector.load %arg1[%c0, %c0_0, %c0_1] : memref<1x4x342xbf16, #tpu.memory_space<vmem>>, vector<1x4x288xbf16>
    %1 = vector.shape_cast %0 : vector<1x4x288xbf16> to vector<4x288xbf16>
    %c0_2 = arith.constant 0 : index
    %c0_3 = arith.constant 0 : index
    %2 = vector.load %arg5[%c0_2, %c0_3] : memref<36x288xbf16, #tpu.memory_space<vmem>>, vector<4x288xbf16>
    tpu.vector_store %arg5[%c0_2, %c0_3], %1 {strides = array<i32>} : memref<36x288xbf16, #tpu.memory_space<vmem>>, vector<4x288xbf16>,
    %c0_4 = arith.constant 0 : index
    %c0_5 = arith.constant 0 : index
    %c1 = arith.constant 1 : index
    %3 = vector.load %arg1[%c0_4, %c0_5, %c1] : memref<1x4x342xbf16, #tpu.memory_space<vmem>>, vector<1x4x288xbf16>
    %4 = vector.shape_cast %3 : vector<1x4x288xbf16> to vector<4x288xbf16>
    %c4 = arith.constant 4 : index
    %c0_6 = arith.constant 0 : index
    %5 = vector.load %arg5[%c4, %c0_6] : memref<36x288xbf16, #tpu.memory_space<vmem>>, vector<4x288xbf16>
    tpu.vector_store %arg5[%c4, %c0_6], %4 {strides = array<i32>} : memref<36x288xbf16, #tpu.memory_space<vmem>>, vector<4x288xbf16>,
    %c0_7 = arith.constant 0 : index
    %c0_8 = arith.constant 0 : index
    %c2 = arith.constant 2 : index
    %6 = vector.load %arg1[%c0_7, %c0_8, %c2] : memref<1x4x342xbf16, #tpu.memory_space<vmem>>, vector<1x4x288xbf16>
    %7 = vector.shape_cast %6 : vector<1x4x288xbf16> to vector<4x288xbf16>
    %c8 = arith.constant 8 : index
    %c0_9 = arith.constant 0 : index
    %8 = vector.load %arg5[%c8, %c0_9] : memref<36x288xbf16, #tpu.memory_space<vmem>>, vector<4x288xbf16>
    tpu.vector_store %arg5[%c8, %c0_9], %7 {strides = array<i32>} : memref<36x288xbf16, #tpu.memory_space<vmem>>, vector<4x288xbf16>,
    %c0_10 = arith.constant 0 : index
    %c0_11 = arith.constant 0 : index
    %c18 = arith.constant 18 : index
    %9 = vector.load %arg1[%c0_10, %c0_11, %c18] : memref<1x4x342xbf16, #tpu.memory_space<vmem>>, vector<1x4x288xbf16>
    %10 = vector.shape_cast %9 : vector<1x4x288xbf16> to vector<4x288xbf16>
    %c12 = arith.constant 12 : index
    %c0_12 = arith.constant 0 : index
    %11 = vector.load %arg5[%c12, %c0_12] : memref<36x288xbf16, #tpu.memory_space<vmem>>, vector<4x288xbf16>
    tpu.vector_store %arg5[%c12, %c0_12], %10 {strides = array<i32>} : memref<36x288xbf16, #tpu.memory_space<vmem>>, vector<4x288xbf16>,
    %c0_13 = arith.constant 0 : index
    %c0_14 = arith.constant 0 : index
    %c19 = arith.constant 19 : index
    %12 = vector.load %arg1[%c0_13, %c0_14, %c19] : memref<1x4x342xbf16, #tpu.memory_space<vmem>>, vector<1x4x288xbf16>
    %13 = vector.shape_cast %12 : vector<1x4x288xbf16> to vector<4x288xbf16>
    %c16 = arith.constant 16 : index
    %c0_15 = arith.constant 0 : index
    %14 = vector.load %arg5[%c16, %c0_15] : memref<36x288xbf16, #tpu.memory_space<vmem>>, vector<4x288xbf16>
    tpu.vector_store %arg5[%c16, %c0_15], %13 {strides = array<i32>} : memref<36x288xbf16, #tpu.memory_space<vmem>>, vector<4x288xbf16>,
    %c0_16 = arith.constant 0 : index
    %c0_17 = arith.constant 0 : index
    %c20 = arith.constant 20 : index
    %15 = vector.load %arg1[%c0_16, %c0_17, %c20] : memref<1x4x342xbf16, #tpu.memory_space<vmem>>, vector<1x4x288xbf16>
    %16 = vector.shape_cast %15 : vector<1x4x288xbf16> to vector<4x288xbf16>
    %c20_18 = arith.constant 20 : index
    %c0_19 = arith.constant 0 : index
    %17 = vector.load %arg5[%c20_18, %c0_19] : memref<36x288xbf16, #tpu.memory_space<vmem>>, vector<4x288xbf16>
    tpu.vector_store %arg5[%c20_18, %c0_19], %16 {strides = array<i32>} : memref<36x288xbf16, #tpu.memory_space<vmem>>, vector<4x288xbf16>,
    %c0_20 = arith.constant 0 : index
    %c0_21 = arith.constant 0 : index
    %c36 = arith.constant 36 : index
    %18 = vector.load %arg1[%c0_20, %c0_21, %c36] : memref<1x4x342xbf16, #tpu.memory_space<vmem>>, vector<1x4x288xbf16>
    %19 = vector.shape_cast %18 : vector<1x4x288xbf16> to vector<4x288xbf16>
    %c24 = arith.constant 24 : index
    %c0_22 = arith.constant 0 : index
    %20 = vector.load %arg5[%c24, %c0_22] : memref<36x288xbf16, #tpu.memory_space<vmem>>, vector<4x288xbf16>
    tpu.vector_store %arg5[%c24, %c0_22], %19 {strides = array<i32>} : memref<36x288xbf16, #tpu.memory_space<vmem>>, vector<4x288xbf16>,
    %c0_23 = arith.constant 0 : index
    %c0_24 = arith.constant 0 : index
    %c37 = arith.constant 37 : index
    %21 = vector.load %arg1[%c0_23, %c0_24, %c37] : memref<1x4x342xbf16, #tpu.memory_space<vmem>>, vector<1x4x288xbf16>
    %22 = vector.shape_cast %21 : vector<1x4x288xbf16> to vector<4x288xbf16>
    %c28 = arith.constant 28 : index
    %c0_25 = arith.constant 0 : index
    %23 = vector.load %arg5[%c28, %c0_25] : memref<36x288xbf16, #tpu.memory_space<vmem>>, vector<4x288xbf16>
    tpu.vector_store %arg5[%c28, %c0_25], %22 {strides = array<i32>} : memref<36x288xbf16, #tpu.memory_space<vmem>>, vector<4x288xbf16>,
    %c0_26 = arith.constant 0 : index
    %c0_27 = arith.constant 0 : index
    %c38 = arith.constant 38 : index
    %24 = vector.load %arg1[%c0_26, %c0_27, %c38] : memref<1x4x342xbf16, #tpu.memory_space<vmem>>, vector<1x4x288xbf16>
    %25 = vector.shape_cast %24 : vector<1x4x288xbf16> to vector<4x288xbf16>
    %c32 = arith.constant 32 : index
    %c0_28 = arith.constant 0 : index
    %26 = vector.load %arg5[%c32, %c0_28] : memref<36x288xbf16, #tpu.memory_space<vmem>>, vector<4x288xbf16>
    tpu.vector_store %arg5[%c32, %c0_28], %25 {strides = array<i32>} : memref<36x288xbf16, #tpu.memory_space<vmem>>, vector<4x288xbf16>,
    %c0_29 = arith.constant 0 : index
    %c0_30 = arith.constant 0 : index
    %27 = vector.load %arg2[%c0_29, %c0_30] : memref<8x36xbf16, #tpu.memory_space<vmem>>, vector<8x36xbf16>
    %c0_31 = arith.constant 0 : index
    %c0_32 = arith.constant 0 : index
    %28 = vector.load %arg5[%c0_31, %c0_32] : memref<36x288xbf16, #tpu.memory_space<vmem>>, vector<36x288xbf16>
    %cst = arith.constant dense<0.000000e+00> : vector<8x288xf32>
    %29 = tpu.matmul %27, %28, %cst {dimension_numbers = #tpu.dot_dimension_numbers<[1], [0], [0], [1], [0, 0, 1, 1], [], []>} : vector<8x36xbf16>, vector<36x288xbf16>, vector<8x288xf32> -> vector<8x288xf32>
    %c0_33 = arith.constant 0 : index
    %c0_34 = arith.constant 0 : index
    %30 = vector.load %arg3[%c0_33, %c0_34] : memref<8x1xf32, #tpu.memory_space<vmem>>, vector<8x1xf32>
    %31 = vector.broadcast %30 : vector<8x1xf32> to vector<8x288xf32>
    %32 = arith.addf %29, %31 : vector<8x288xf32>
    %cst_35 = arith.constant 0.000000e+00 : f32
    %33 = vector.broadcast %cst_35 : f32 to vector<8x288xf32>
    %34 = arith.cmpf ogt, %32, %33 : vector<8x288xf32>
    %cst_36 = arith.constant 1.000000e-01 : f32
    %35 = vector.broadcast %cst_36 : f32 to vector<8x288xf32>
    %36 = arith.mulf %35, %32 : vector<8x288xf32>
    %37 = arith.select %34, %32, %36 : vector<8x288xi1>, vector<8x288xf32>
    %c0_37 = arith.constant 0 : index
    %c0_38 = arith.constant 0 : index
    %c0_39 = arith.constant 0 : index
    %38 = vector.load %arg4[%c0_37, %c0_38, %c0_39] : memref<1x8x288xf32, #tpu.memory_space<vmem>>, vector<1x8x288xf32>
    %39 = vector.shape_cast %38 : vector<1x8x288xf32> to vector<8x288xf32>
    %40 = vector.shape_cast %37 : vector<8x288xf32> to vector<1x8x288xf32>
    tpu.vector_store %arg4[%c0_37, %c0_38, %c0_39], %40 {strides = array<i32>} : memref<1x8x288xf32, #tpu.memory_space<vmem>>, vector<1x8x288xf32>,
    return
  }
  func.func @transform_0(%arg0: i32) -> (i32, i32, i32) {
    %c0_i32 = arith.constant 0 : i32
    %c0_i32_0 = arith.constant 0 : i32
    %c0_i32_1 = arith.constant 0 : i32
    return %arg0, %c0_i32, %c0_i32_0 : i32, i32, i32
  }
  func.func @transform_1(%arg0: i32) -> (i32, i32) {
    %c0_i32 = arith.constant 0 : i32
    %c0_i32_0 = arith.constant 0 : i32
    %c0_i32_1 = arith.constant 0 : i32
    return %c0_i32, %c0_i32_0 : i32, i32
  }
  func.func @transform_2(%arg0: i32) -> (i32, i32) {
    %c0_i32 = arith.constant 0 : i32
    %c0_i32_0 = arith.constant 0 : i32
    %c0_i32_1 = arith.constant 0 : i32
    return %c0_i32, %c0_i32_0 : i32, i32
  }
  func.func @transform_3(%arg0: i32) -> (i32, i32, i32) {
    %c0_i32 = arith.constant 0 : i32
    %c0_i32_0 = arith.constant 0 : i32
    %c0_i32_1 = arith.constant 0 : i32
    return %arg0, %c0_i32, %c0_i32_0 : i32, i32, i32
  }
}

</mosaic_0001>

<bundles_post_ra>
// kernel: tpu_custom_call.1
= control target key start
LH: loop header
LB: loop body
LE: loop exit
PB: predicated region body
PF: predicated region fallthrough
CT: control target
= control target key end

     0   :  { %8 = vsyncpa [#allocation4], 0  ;;  %s965_s0 = inlined_call_operand.hbm [shape: bf16[2,4,342], index: 0, kind: input, shape index: {}]   ;;  %s966_s1 = inlined_call_operand.vmem [shape: bf16[8,36], index: 1, kind: input, shape index: {}]   ;;  %s967_s2 = inlined_call_operand.vmem [shape: f32[8,1], index: 2, kind: input, shape index: {}]   ;;  %s968_s3 = inlined_call_operand.hbm [shape: f32[2,8,288], index: 3, kind: output, shape index: {}]  }
   0x1   :  { %10 = vsyncpa [#allocation4 + $0x1], 0 }
   0x2   :  { %11 = vsyncpa [#allocation5], 0 }
   0x3   :  { %13 = vsyncpa [#allocation5 + $0x1], 0  ;;  %s806_s12 = smov 0   ;;  %s808_s13 = smov 0  }
   0x4   :  { %s810_s14 = smov 0   ;;  %s812_s15 = smov 0  }
   0x5 LB: > { %s827_s16 = sadd.s32 4294967295, %s775_s15   ;;  %s576_s17 = sadd.s32 4294967294, %s775_s15   ;;  %s775_s15 = sphi %s812_s15, %s976_s15   ;;  %s771_s14 = sphi %s810_s14, %s975_s14   ;;  %s767_s13 = sphi %s808_s13, %s974_s13   ;;  %s763_s12 = sphi %s806_s12, %s973_s12  }
   0x6   : > { %s831_s18 = sadd.s32 1, %s775_s15   ;;  %s26_s19 = sadd.s32 1, %s771_s14 }
   0x7   : > { %s23_s20 = ssub.s32 %s775_s15, %s831_s18  ;;  %p33_p0 = scmp.ne.s32.totalorder %s771_s14, %s767_s13 }
   0x8   : > { %p24_p1 = scmp.eq.s32.totalorder %s23_s20, 0  ;;  %p34_p2 = scmp.eq.s32.totalorder %s775_s15, 0 }
   0x9   : > { %p39_p3 = scmp.ne.s32.totalorder %s767_s13, %s763_s12  ;;  %p40_p4 = scmp.eq.s32.totalorder %s827_s16, 0 }
   0xa   : > { %s843_s21 = scalar_select %p24_p1, %s771_s14, %s26_s19  }
   0xb   : > { %p35_p5 = por %p34_p2, %p33_p0  ;;  %p845_p6 = por %p40_p4, %p39_p3 }
   0xc   : > { %p105_p7 = scmp.eq.s32.totalorder %s827_s16, 1  ;;  %p111_p8 = scmp.eq.s32.totalorder %s576_s17, 1 }
   0xd   : > { %p578_p9 = scmp.ge.s32.totalorder %s775_s15, 2  ;;  %p634_p10 = scmp.lt.s32.totalorder %s775_s15, 2 }
   0xe   : > { %p852_p11 = por %p105_p7, %p33_p0  ;;  %p856_p12 = por %p111_p8, %p39_p3 }
   0xf   : > { %s137_s25 = sand.u32 1, %s771_s14   ;;  %s618_s26 = smul.u32 6, %s775_s15 }
  0x10   : > { %s617_s27 = smul.u32 6, %s137_s25  ;;  %p865_p13 = pnand %p634_p10, %p35_p5 }
  0x11   : > { %s146_s30 = scalar_lea.hbm %s965_s0, %s618_s26  ;;  %s138_s8 = scalar_lea.sflag [#allocation4], %s137_s25 }
  0x12   : > { %s148_s5 = sshll.u32 %s146_s30, 4  ;;  %s141_s6 = scalar_lea.vmem [#allocation3], %s617_s27  ;;  %s149_s5 = int_to_ptr.hbm [resolvable:$true] %s148_s5 }
  0x13   : > { %s150_s7 = sshll.u32 %s141_s6, 4  ;;  %s679_s9 = sshra.s32 %s149_s5, 4  ;;  %s151_s7 = int_to_ptr.vmem [resolvable:$true] %s150_s7  ;;  %s680_s9 = int_to_ptr.hbm [resolvable:$true] %s679_s9 }
  0x14   : > { %s681_s10 = scalar_lea.hbm %s680_s9, 6  ;;  %p683_p1 = pneg %p865_p13 }
  0x15   : > { %p682_p0 = scmp.ne.s32.totalorder %s680_s9, %s681_s10  ;;  %s686_s19 = scalar_lea.hbm %s965_s0, 12 }
  0x16   : > { %p687_p4 = scmp.lt.s32.totalorder %s680_s9, %s965_s0  ;;  %p688_p5 = scmp.lt.s32.totalorder %s686_s19, %s681_s10 }
  0x17   : > { %p684_p2 = pnand %p683_p1, %p682_p0 }
  0x18   : > { %p689_p7 = por %p688_p5, %p687_p4 }
  0x19   : > { %p685_p3 = pneg %p684_p2 }
  0x1b   : > { %p690_p8 = pnand %p689_p7, %p685_p3 }
  0x1d   : > { %693 = shalt.err (!%p690_p8)
}
  0x1e   : > { %629 = dma.hbm_to_vmem [thread:$0]  (!%p865_p13), %s149_s5, 96, %s151_s7, %s138_s8  }
  0x1f   : > { %p580_p10 = scmp.ge.s32.totalorder %s775_s15, 1  ;;  %p155_p0 = scmp.lt.s32.totalorder %s775_s15, 3 }
  0x21   : > { %p156_p1 = pnand %p580_p10, %p155_p0 }
  0x22   : > { %s882_s25 = sand.u32 (!%p156_p1), 1, %s767_s13  }
  0x23   : > { %159 = sbr.rel (%p156_p1) target bundleno = 406 (0x196), region = 32  ;;  %s162_s28 = scalar_lea.sflag (!%p156_p1), [#allocation4], %s882_s25 }
  0x24   : > { %s619_s27 = smul.u32 (!%p156_p1), 6, %s882_s25 }
  0x26   : > { %s886_s29 = scalar_lea.vmem (!%p156_p1), [#allocation3], %s619_s27 }
  0x28   : > { %754 = dma.done.wait (%p845_p6), %s162_s28, 96  }
  0x29   : > { %756 = vsyncadd (%p845_p6), %s162_s28, 4294967200  ;;  %v190_v0 = vld [vmem:[%s886_s29] sm:$0x3f]  ;;  %s777_s30 = smov 127   ;;  %s778_s22 = smov 126   ;;  %vm198_vm0 = vcmask 254976  }
  0x2a   : > { %192 = vst [vmem:[#allocation1] ss:$2 sm:$0xff] %v190_v0  ;;  %v200_v1 = vld [vmem:[%s886_s29] sm:$0x3f]  ;;  %s779_s4 = smov 109   ;;  %s780_s5 = smov 108  }
  0x2b   : > { %v223_v4 = vld [vmem:[%s886_s29] sm:$0x3f]  ;;  %s781_s6 = smov 92   ;;  %s782_s7 = smov 91   ;;  %vm221_vm1 = vcmask 257026   ;;  %vm214_vm2 = vcmask 1043456  }
  0x2c   : > { %v243_v7 = vld [vmem:[%s886_s29] sm:$0x3f]  ;;  %s783_s8 = smov 90   ;;  %s784_s9 = smov 110   ;;  %vm278_vm3 = vcmask 891904   ;;  %vm319_vm4 = vcmask 752640  }
  0x2d   : > { %v264_v10 = vld [vmem:[%s886_s29] sm:$0x3f]  ;;  %vm299_vm5 = vcmask 883712   ;;  %vm237_vm6 = vcmask 1031168   ;;  %vm216_vm7 = vcmask 1039360   ;;  %vm340_vm8 = vcmask 744448  }
  0x2e   : > { %v284_v13 = vld [vmem:[%s886_s29] sm:$0x3f]  ;;  %vm360_vm9 = vcmask 736256   ;;  %vm427_vm10 = vcmask 1041408   ;;  %vm258_vm11 = vcmask 900096   ;;  %vm423_vm12 = vcmask 293888  }
  0x2f   : > { %v305_v16 = vld [vmem:[%s886_s29] sm:$0x3f]  ;;  %s620_s20 = smul.u32 24, %s882_s25  ;;  %vm487_vm13 = vcmask 261120  }
  0x30   : > { %v325_v19 = vld [vmem:[%s886_s29] sm:$0x3f]  ;;  %s621_s26 = smul.u32 24, %s827_s16  ;;  %s490_s16 = scalar_lea.sflag [#allocation5], %s882_s25 }
  0x31   : > { %v193_v2 = vld.sshfl [vmem:[#allocation1] sm:$0xff pattern:$0x75643120]  ;;  %v194_v3 = vld.sshfl [vmem:[#allocation1 + $0x8] sm:$0xff pattern:$0x75643120] }
  0x32   : > { %203 = vst [vmem:[#allocation1 + $0x1] ss:$2 sm:$0xff] %v200_v1  ;;  %v346_v22 = vld [vmem:[%s886_s29] sm:$0x3f]  ;;  %s501_s29 = scalar_lea.hbm %s968_s3, %s621_s26 }
  0x33   : > { %197 = vst [vmem:[#allocation2] sm:$0x33] %v193_v2 }
  0x34   : > { %199 = vst.msk [vmem:[#allocation2 + $0x8] sm:$0x3] %vm198_vm0, %v194_v3 }
  0x39   : > { %v206_v5 = vld.sshfl [vmem:[#allocation1 + $0x8] sm:$0xff pattern:$0x75643120]  ;;  %v204_v6 = vld.sshfl [vmem:[#allocation1] sm:$0xff pattern:$0x75643120] }
  0x3a   : > { %210 = vrot.lane.b32.xlu1 %v206_v5, %s777_s30  ;;  %225 = vst [vmem:[#allocation1] ss:$2 sm:$0xff] %v223_v4  ;;  %v377_v5 = vld [vmem:[%s967_s2] sm:$0xff] }
  0x41   : > { %v226_v8 = vld.sshfl [vmem:[#allocation1] sm:$0xff pattern:$0x75643120]  ;;  %v228_v9 = vld.sshfl [vmem:[#allocation1 + $0x8] sm:$0xff pattern:$0x75643120] }
  0x42   : > { %246 = vst [vmem:[#allocation1 + $0x1] ss:$2 sm:$0xff] %v243_v7  ;;  %232 = vrot.lane.b32.xlu2 %v228_v9, %s778_s22 }
  0x49   : > { %v247_v11 = vld.sshfl [vmem:[#allocation1] sm:$0xff pattern:$0x75643120]  ;;  %v249_v12 = vld.sshfl [vmem:[#allocation1 + $0x8] sm:$0xff pattern:$0x75643120] }
  0x4a   : > { %266 = vst [vmem:[#allocation1] ss:$2 sm:$0xff] %v264_v10 }
  0x51   : > { %v269_v14 = vld.sshfl [vmem:[#allocation1 + $0x8] sm:$0xff pattern:$0x75643120]  ;;  %v267_v15 = vld.sshfl [vmem:[#allocation1] sm:$0xff pattern:$0x75643120] }
  0x52   : > { %273 = vrot.lane.b32.xlu1 %v269_v14, %s779_s4  ;;  %287 = vst [vmem:[#allocation1 + $0x1] ss:$2 sm:$0xff] %v284_v13  ;;  %271 = vrot.lane.b32.xlu0 %v267_v15, %s779_s4  ;;  %s505_s4 = sshll.u32 %s501_s29, 4  ;;  %s506_s4 = int_to_ptr.hbm [resolvable:$true] %s505_s4 }
  0x59   : > { %v290_v17 = vld.sshfl [vmem:[#allocation1 + $0x8] sm:$0xff pattern:$0x75643120]  ;;  %v288_v18 = vld.sshfl [vmem:[#allocation1] sm:$0xff pattern:$0x75643120] }
  0x5a   : > { %294 = vrot.lane.b32.xlu1 %v290_v17, %s780_s5  ;;  %307 = vst [vmem:[#allocation1] ss:$2 sm:$0xff] %v305_v16 }
  0x61   : > { %v310_v20 = vld.sshfl [vmem:[#allocation1 + $0x8] sm:$0xff pattern:$0x75643120]  ;;  %v308_v21 = vld.sshfl [vmem:[#allocation1] sm:$0xff pattern:$0x75643120] }
  0x62   : > { %292 = vrot.lane.b32.xlu1 %v288_v18, %s780_s5  ;;  %314 = vrot.lane.b32.xlu2 %v310_v20, %s781_s6  ;;  %328 = vst [vmem:[#allocation1 + $0x1] ss:$2 sm:$0xff] %v325_v19  ;;  %s723_s5 = sshra.s32 %s506_s4, 4  ;;  %s724_s5 = int_to_ptr.hbm [resolvable:$true] %s723_s5 }
  0x63   : > { %p730_p3 = scmp.lt.s32.totalorder %s724_s5, %s968_s3 }
  0x69   : > { %v331_v23 = vld.sshfl [vmem:[#allocation1 + $0x8] sm:$0xff pattern:$0x75643120]  ;;  %v329_v24 = vld.sshfl [vmem:[#allocation1] sm:$0xff pattern:$0x75643120] }
  0x6a   : > { %208 = vrot.lane.b32.xlu1 %v204_v6, %s777_s30  ;;  %333 = vrot.lane.b32.xlu0 %v329_v24, %s782_s7  ;;  %348 = vst [vmem:[#allocation1] ss:$2 sm:$0xff] %v346_v22  ;;  %s188_s30 = scalar_lea.vmem [#allocation6], %s620_s20 }
  0x6b   : > { %312 = vrot.lane.b32.xlu2 %v308_v21, %s781_s6  ;;  %s725_s6 = scalar_lea.hbm %s724_s5, 24 }
  0x6c   : > { %p726_p6 = scmp.ne.s32.totalorder %s724_s5, %s725_s6 }
  0x6e   : > { %p727_p13 = pnand %p726_p6, %p852_p11 }
  0x70   : > { %p728_p2 = pneg %p727_p13 }
  0x71   : > { %v351_v25 = vld.sshfl [vmem:[#allocation1 + $0x8] sm:$0xff pattern:$0x75643120]  ;;  %v349_v26 = vld.sshfl [vmem:[#allocation1] sm:$0xff pattern:$0x75643120] }
  0x72   : > { %355 = vrot.lane.b32.xlu0 %v351_v25, %s783_s8 }
  0x73   : > { %335 = vrot.lane.b32.xlu2 %v331_v23, %s782_s7 }
  0x7a   : > { %353 = vrot.lane.b32.xlu0 %v349_v26, %s783_s8 }
  0x7b   : > { %230 = vrot.lane.b32.xlu2 %v226_v8, %s778_s22  ;;  %v785_v8 = vmov 0   ;;  %s503_s22 = sshll.u32 %s188_s30, 4  ;;  %s504_s22 = int_to_ptr.vmem [resolvable:$true] %s503_s22 }
  0x7c   : > { %677 = vset.pattern.permute.xlu1 %v785_v8  ;;  %678 = vset.pattern.permute.xlu0 %v785_v8 }
  0x7d   : > { %380 = vperm.xlu1 %677, %v377_v5  }
  0x82   : > { %253 = vrot.lane.b32.xlu0 %v249_v12, %s784_s9 }
  0x8a   : > { %251 = vrot.lane.b32.xlu0 %v247_v11, %s784_s9  ;;  %s729_s9 = scalar_lea.hbm %s968_s3, 48 }
  0x8b   : > { %p731_p4 = scmp.lt.s32.totalorder %s729_s9, %s725_s6 }
  0x8d   : > { %p732_p5 = por %p731_p4, %p730_p3 }
  0x8f   : > { %p733_p7 = pnand %p732_p5, %p728_p2 }
  0x9c   : > { %v233_v27 = vpop.permute.xlu2 %232 }
  0x9d   : > { %242 = vst.msk [vmem:[#allocation2 + $0x14] sm:$0x3] %vm198_vm0, %v233_v27  ;;  %v235_v44 = vrot.slane %v233_v27, 4 }
  0xac   : > { %v211_v28 = vpop.permute.xlu1 %210 }
  0xad   : > { %222 = vst.msk [vmem:[#allocation2 + $0x8] sm:$0xc] %vm221_vm1, %v211_v28  ;;  %v213_v53 = vrot.slane %v211_v28, 4 }
  0xb4   : > { %v591_v20 = vld [vmem:[#allocation2 + $0x8] sm:$0xf] }
  0xbc   : > { %v315_v29 = vpop.permute.xlu2 %314 }
  0xbd   : > { %324 = vst.msk [vmem:[#allocation2 + $0x2c] sm:$0x3] %vm198_vm0, %v315_v29  ;;  %v317_v31 = vrot.slane %v315_v29, 4 }
  0xc4   : > { %v274_v30 = vpop.permute.xlu1 %273  ;;  %v272_v32 = vpop.permute.xlu0 %271 }
  0xc5   : > { %v276_v33 = vrot.slane %v274_v30, 4  ;;  %283 = vst.msk [vmem:[#allocation2 + $0x20] sm:$0x3] %vm198_vm0, %v274_v30  ;;  %v313_v34 = vpop.permute.xlu2 %312  ;;  %v275_v35 = vrot.slane %v272_v32, 4 }
  0xc6   : > { %v316_v36 = vrot.slane %v313_v34, 4 }
  0xc7   : > { %v277_v37 = vsel %vm214_vm2, %v275_v35, %v276_v33 }
  0xc8   : > { %v318_v38 = vsel %vm214_vm2, %v316_v36, %v317_v31  ;;  %v279_v39 = vsel %vm278_vm3, %v272_v32, %v277_v37  ;;  %v366_v36 = vld [vmem:[%s966_s1] sm:$0xf] }
  0xc9   : > { %v320_v40 = vsel %vm319_vm4, %v313_v34, %v318_v38  ;;  %282 = vst [vmem:[#allocation2 + $0x18] sm:$0x33] %v279_v39 }
  0xca   : > { %323 = vst [vmem:[#allocation2 + $0x24] sm:$0x33] %v320_v40 }
  0xcc   : > { %v295_v41 = vpop.permute.xlu1 %294 }
  0xcd   : > { %304 = vst.msk [vmem:[#allocation2 + $0x20] sm:$0xc] %vm221_vm1, %v295_v41  ;;  %v336_v42 = vpop.permute.xlu2 %335  ;;  %v297_v43 = vrot.slane %v295_v41, 4 }
  0xce   : > { %345 = vst.msk [vmem:[#allocation2 + $0x2c] sm:$0xc] %vm221_vm1, %v336_v42  ;;  %v338_v54 = vrot.slane %v336_v42, 4 }
  0xd4   : > { %v293_v45 = vpop.permute.xlu1 %292  ;;  %v603_v10 = vld [vmem:[#allocation2 + $0x20] sm:$0xf] }
  0xd5   : > { %v296_v46 = vrot.slane %v293_v45, 4  ;;  %v231_v47 = vpop.permute.xlu2 %230  ;;  %v616_v12 = vld [vmem:[#allocation2 + $0x28] sm:$0xf0] }
  0xd6   : > { %v234_v48 = vrot.slane %v231_v47, 4  ;;  %v604_v14 = vor.u32 %v616_v12, %v603_v10 }
  0xd7   : > { %v298_v49 = vsel %vm214_vm2, %v296_v46, %v297_v43 }
  0xd8   : > { %v300_v50 = vsel %vm299_vm5, %v293_v45, %v298_v49  ;;  %v236_v51 = vsel %vm214_vm2, %v234_v48, %v235_v44 }
  0xd9   : > { %303 = vst [vmem:[#allocation2 + $0x18] sm:$0xcc] %v300_v50  ;;  %v238_v52 = vsel %vm237_vm6, %v231_v47, %v236_v51 }
  0xda   : > { %241 = vst [vmem:[#allocation2 + $0xc] sm:$0x33] %v238_v52 }
  0xdc   : > { %v209_v55 = vpop.permute.xlu1 %208  ;;  %v334_v56 = vpop.permute.xlu0 %333 }
  0xdd   : > { %v212_v57 = vrot.slane %v209_v55, 4  ;;  %v337_v58 = vrot.slane %v334_v56, 4 }
  0xdf   : > { %v215_v59 = vsel %vm214_vm2, %v212_v57, %v213_v53  ;;  %v339_v60 = vsel %vm214_vm2, %v337_v58, %v338_v54 }
  0xe0   : > { %v217_v61 = vsel %vm216_vm7, %v209_v55, %v215_v59  ;;  %v341_v62 = vsel %vm340_vm8, %v334_v56, %v339_v60  ;;  %v595_v31 = vld [vmem:[#allocation2 + $0x18] sm:$0xf]  ;;  %v614_v32 = vld [vmem:[#allocation2 + $0x1c] sm:$0xf] }
  0xe1   : > { %220 = vst [vmem:[#allocation2] sm:$0xcc] %v217_v61 }
  0xe2   : > { %344 = vst [vmem:[#allocation2 + $0x24] sm:$0xcc] %v341_v62 }
  0xe4   : > { %v356_v63 = vpop.permute.xlu0 %355 }
  0xe5   : > { %365 = vst.msk [vmem:[#allocation2 + $0x38] sm:$0x3] %vm198_vm0, %v356_v63  ;;  %v358_v2 = vrot.slane %v356_v63, 4 }
  0xe8   : > { %v583_v37 = vld [vmem:[#allocation2] sm:$0xf]  ;;  %v611_v39 = vld [vmem:[#allocation2 + $0x4] sm:$0xf] }
  0xe9   : > { %v615_v24 = vld [vmem:[#allocation2 + $0x20] sm:$0xf0]  ;;  %v597_v29 = vld [vmem:[#allocation2 + $0x24] sm:$0xf0] }
  0xea   : > { %v596_v34 = vor.u32 %v615_v24, %v595_v31  ;;  %v600_v35 = vor.u32 %v614_v32, %v597_v29 }
  0xec   : > { %v354_v0 = vpop.permute.xlu0 %353  ;;  %v376_v1 = vld [vmem:[#allocation2 + $0x38] sm:$0x3] }
  0xed   : > { %v357_v3 = vrot.slane %v354_v0, 4  ;;  %v407_v4 = vunpack.c.l.b16 %v376_v1 }
  0xef   : > { %v359_v6 = vsel %vm214_vm2, %v357_v3, %v358_v2  ;;  %v416_v7 = vpack.c.b16 %v407_v4, %v407_v4  ;;  %v381_v43 = vpop.permute.xlu1 %380 }
  0xf0   : > { %v361_v9 = vsel %vm360_vm9, %v354_v0, %v359_v6 }
  0xf1   : > { %364 = vst [vmem:[#allocation2 + $0x30] sm:$0x33] %v361_v9  ;;  %v435_v11 = vsel %vm427_vm10, %v416_v7, 0 }
  0xf2   : > { %468 = vmatpush.bf16.msra.mxu2 %v435_v11 }
  0xf4   : > { %v254_v13 = vpop.permute.xlu0 %253 }
  0xf5   : > { %263 = vst.msk [vmem:[#allocation2 + $0x14] sm:$0xc] %vm221_vm1, %v254_v13  ;;  %v256_v21 = vrot.slane %v254_v13, 4 }
  0xf6   : > { %469 = vmatpush.bf16.msra.mxu2 %v604_v14 }
  0xf8   : > { %v375_v15 = vld [vmem:[#allocation2 + $0x30] sm:$0x33] }
  0xf9   : > { %v405_v16 = vunpack.c.l.b16 %v375_v15  ;;  %v406_v17 = vunpack.c.h.b16 %v375_v15 }
  0xfb   : > { %v414_v18 = vpack.c.b16 %v405_v16, %v405_v16  ;;  %v415_v19 = vpack.c.b16 %v406_v17, %v406_v17 }
  0xfc   : > { %v252_v22 = vpop.permute.xlu0 %251  ;;  %v613_v23 = vld [vmem:[#allocation2 + $0x10] sm:$0xf0] }
  0xfd   : > { %v255_v25 = vrot.slane %v252_v22, 4  ;;  %v429_v26 = vsel %vm427_vm10, %v414_v18, 0  ;;  %v432_v27 = vsel %vm427_vm10, %v415_v19, 0  ;;  %v592_v28 = vor.u32 %v613_v23, %v591_v20 }
  0xfe   : > { %442 = vmatpush.bf16.msra.mxu0 %v429_v26  ;;  %455 = vmatpush.bf16.msra.mxu1 %v432_v27 }
  0xff   : > { %v257_v30 = vsel %vm214_vm2, %v255_v25, %v256_v21  ;;  %470 = vmatpush.bf16.msra.mxu2 %v592_v28 }
 0x100   : > { %v259_v33 = vsel %vm258_vm11, %v252_v22, %v257_v30 }
 0x101   : > { %262 = vst [vmem:[#allocation2 + $0xc] sm:$0xcc] %v259_v33 }
 0x102   : > { %443 = vmatpush.bf16.msra.mxu0 %v596_v34  ;;  %456 = vmatpush.bf16.msra.mxu1 %v600_v35 }
 0x103   : > { %607 = vmatmul.msk.bf16.vlgmr.msra.gmra.mxu2 %vm423_vm12, %v366_v36 }
 0x108   : > { %v612_v38 = vld [vmem:[#allocation2 + $0x8] sm:$0xf0]  ;;  %v585_v40 = vld [vmem:[#allocation2 + $0xc] sm:$0xf0] }
 0x109   : > { %v584_v41 = vor.u32 %v612_v38, %v583_v37  ;;  %v588_v42 = vor.u32 %v611_v39, %v585_v40 }
 0x10b   : > { %444 = vmatpush.bf16.msra.mxu0 %v584_v41  ;;  %457 = vmatpush.bf16.msra.mxu1 %v588_v42 }
 0x10e   : > { %605 = vmatmul.msk.bf16.vlgmr.msra.gmra.mxu0 %vm423_vm12, %v366_v36  ;;  %606 = vmatmul.msk.bf16.vlgmr.msra.gmra.mxu1 %vm423_vm12, %v366_v36 }
 0x186   : > { %v472_v44 = vpop.f32.mrf.mxu2 }
 0x187   : > { %v473_v45 = vadd.f32 %v472_v44, %v381_v43 }
 0x189   : > { %vm478_vm14 = vcmp.gt.f32.partialorder %v473_v45, 0.0  ;;  %v481_v46 = vmul.f32 0.1, %v473_v45 }
 0x18b   : > { %v484_v47 = vsel %vm478_vm14, %v473_v45, %v481_v46  ;;  %v446_v48 = vpop.f32.mrf.mxu0  ;;  %v459_v49 = vpop.f32.mrf.mxu1 }
 0x18c   : > { %488 = vst.msk [vmem:[%s188_s30 + $0x10] sm:$0xff] %vm487_vm13, %v484_v47  ;;  %v447_v50 = vadd.f32 %v446_v48, %v381_v43  ;;  %v460_v51 = vadd.f32 %v459_v49, %v381_v43 }
 0x18e   : > { %vm476_vm15 = vcmp.gt.f32.partialorder %v447_v50, 0.0  ;;  %v479_v52 = vmul.f32 0.1, %v447_v50  ;;  %vm477_vm0 = vcmp.gt.f32.partialorder %v460_v51, 0.0  ;;  %v480_v53 = vmul.f32 0.1, %v460_v51  ;;  %v474_v54 = vpop.f32.mrf.mxu2 }
 0x190   : > { %v482_v55 = vsel %vm476_vm15, %v447_v50, %v479_v52  ;;  %v483_v56 = vsel %vm477_vm0, %v460_v51, %v480_v53 }
 0x191   : > { %485 = vst [vmem:[%s188_s30] sm:$0xff] %v482_v55 }
 0x192   : > { %486 = vst [vmem:[%s188_s30 + $0x8] sm:$0xff] %v483_v56 }
 0x193   : > { %v448_v57 = vpop.f32.mrf.mxu0  ;;  %v461_v58 = vpop.f32.mrf.mxu1 }
 0x194   : > { %736 = shalt.err (!%p733_p7)
}
 0x195   : > { %624 = dma.vmem_to_hbm [thread:$0]  (%p852_p11), %s504_s22, 384, %s506_s4, %s490_s16  }
 0x196 PF: > { %s517_s25 = sand.u32 1, %s763_s12   ;;  %p631_p8 = pnand %p578_p9, %p856_p12 }
 0x197   : > { %s518_s17 = scalar_lea.sflag [#allocation5], %s517_s25 }
 0x198   : > { %p632_p10 = pneg %p631_p8 }
 0x19a   : > { %758 = dma.done.wait (%p632_p10), %s518_s17, 384  }
 0x19b   : > { %760 = vsyncadd (%p632_p10), %s518_s17, 4294966912  ;;  %p16_p0 = scmp.ge.s32.totalorder %s831_s18, 4   ;;  %s973_s12 = smov %s767_s13 }
 0x19c   : > { %s974_s13 = smov %s771_s14  ;;  %s975_s14 = smov %s843_s21 }
 0x19d   : > { %s976_s15 = smov %s831_s18  ;;  %18 = sbr.rel (!%p16_p0) target bundleno = 5 (0x5), region = 81 }
 0x1a2   :  { %524 = vsyncpa [#allocation4], 1 }
 0x1a3   :  { %526 = vsyncpa [#allocation4 + $0x1], 1 }
 0x1a4   :  { %527 = vsyncpa [#allocation5], 1 }
 0x1a5   :  { %529 = vsyncpa [#allocation5 + $0x1], 1 }

</bundles_post_ra>
